<compile_context>
chip_gen: v6e
topology: v6e:2x2x1
jax: 0.10.0
libtpu: 0.0.40
codegen_flags: <defaults>
</compile_context>

<pallas_src>
import numpy as np
import jax
import jax.numpy as jnp
from jax import lax
from jax.experimental import pallas as pl
from jax.experimental.pallas import tpu as pltpu

EPS = 1e-5          # nn.LayerNorm default eps
NUM_HEADS = 3       # score, iou, reg
OUT_ROWS = 4        # row0=score, row1=iou, rows 2:4=reg


# ----------------------------------------------------------------------------
# Fused kernel: whole decoder (all heads, all batches) in one grid step
# ----------------------------------------------------------------------------
def decoder_kernel(x_obj_ref, x_glb_ref, w1a_ref, w1b_ref, b1_ref,
                   gamma_ref, beta_ref, w2_ref, b2_ref, out_ref):
    C = x_obj_ref.shape[0]
    N = x_obj_ref.shape[1]                                   # N = B*T (lane axis)

    # First Linear of all three heads (stacked to 3C output rows), split per input half
    # so the (2C, N) activation concat never exists. bf16 MXU operands, f32 accumulation.
    y = (jnp.dot(w1a_ref[...], x_obj_ref[...], preferred_element_type=jnp.float32)
         + jnp.dot(w1b_ref[...], x_glb_ref[...], preferred_element_type=jnp.float32)
         + b1_ref[...])                                      # (3C, N) f32

    gamma = gamma_ref[...]                                   # (3C, 1) f32
    beta = beta_ref[...]                                     # (3C, 1) f32

    # Per-head LayerNorm(C) + ReLU (two-pass stats: mean + centered variance, XLU sublane
    # reductions), then the second Linear accumulated from the per-head W2 column blocks.
    z = jnp.zeros((OUT_ROWS, N), jnp.float32)
    for h in range(NUM_HEADS):
        seg = y[h * C:(h + 1) * C, :]                        # (C, N), sublane-aligned slice
        mu = jnp.mean(seg, axis=0, keepdims=True)            # (1, N)
        d = seg - mu
        var = jnp.mean(d * d, axis=0, keepdims=True)         # biased variance (LayerNorm)
        hn = (d * lax.rsqrt(var + EPS) * gamma[h * C:(h + 1) * C, :]
              + beta[h * C:(h + 1) * C, :])
        hr = jnp.maximum(hn, 0.0).astype(jnp.bfloat16)       # ReLU; bf16 for the MXU
        z = z + jnp.dot(w2_ref[h], hr, preferred_element_type=jnp.float32)
    z = z + b2_ref[...]                                      # (4, N)

    # Rows 0/1 get a sigmoid (score, iou); rows 2:4 stay raw (reg). jax.nn.sigmoid keeps
    # the divide/exp on the EUP slot instead of a VALU divide sequence.
    sig = jax.nn.sigmoid(z)
    row = lax.broadcasted_iota(jnp.int32, z.shape, 0)
    out_ref[...] = jnp.where(row < 2, sig, z).astype(out_ref.dtype)


# ----------------------------------------------------------------------------
# Wrapper: single pallas_call (grid=(1,)), packed (4, B*T) output split in plain JAX
# ----------------------------------------------------------------------------
def temporal_decoder_regression_forward(feature_global, feature_obj, packed):
    """feature_global / feature_obj: (B, C, T) f32. Returns the module's output dict."""
    B, C, T = feature_global.shape
    N = B * T

    # Host-side layout fix: (B, C, T) -> channel-major (C, B*T), cast to bf16 once so the
    # kernel's input DMA bytes are halved and operands hit the native bf16 MXU path.
    x_obj = jnp.transpose(feature_obj, (1, 0, 2)).reshape(C, N).astype(jnp.bfloat16)
    x_glb = jnp.transpose(feature_global, (1, 0, 2)).reshape(C, N).astype(jnp.bfloat16)

    out = pl.pallas_call(
        decoder_kernel,
        grid=(1,),
        in_specs=[
            pl.BlockSpec((C, N), lambda i: (0, 0)),                    # x_obj (bf16)
            pl.BlockSpec((C, N), lambda i: (0, 0)),                    # x_global (bf16)
            pl.BlockSpec((NUM_HEADS * C, C), lambda i: (0, 0)),        # stacked W1, obj half
            pl.BlockSpec((NUM_HEADS * C, C), lambda i: (0, 0)),        # stacked W1, global half
            pl.BlockSpec((NUM_HEADS * C, 1), lambda i: (0, 0)),        # stacked b1
            pl.BlockSpec((NUM_HEADS * C, 1), lambda i: (0, 0)),        # stacked gamma
            pl.BlockSpec((NUM_HEADS * C, 1), lambda i: (0, 0)),        # stacked beta
            pl.BlockSpec((NUM_HEADS, OUT_ROWS, C), lambda i: (0, 0, 0)),  # per-head W2 blocks
            pl.BlockSpec((OUT_ROWS, 1), lambda i: (0, 0)),             # stacked b2
        ],
        out_specs=pl.BlockSpec((OUT_ROWS, N), lambda i: (0, 0)),
        out_shape=jax.ShapeDtypeStruct((OUT_ROWS, N), jnp.float32),
        compiler_params=pltpu.CompilerParams(dimension_semantics=("arbitrary",)),
    )(x_obj, x_glb, packed["w1a"], packed["w1b"], packed["b1"],
      packed["gamma"], packed["beta"], packed["w2"], packed["b2"])

    out = out.reshape(OUT_ROWS, B, T)                        # column b*T+t -> (b, t)
    pred_score = out[0]                                      # (B, T)
    pred_iou = out[1]                                        # (B, T)
    pred_reg = jnp.transpose(out[2:4], (1, 2, 0))            # (B, T, 2)
    return {"temporal_score": pred_score,
            "temporal_reg": pred_reg,
            "temporal_iou": pred_iou}


# ----------------------------------------------------------------------------
# Host-side parameter construction and packing
# ----------------------------------------------------------------------------
def init_params(key, model_dim):
    """Deterministic synthetic weights matching the PyTorch module's shapes."""
    C = model_dim
    in_dim = 2 * C
    specs = [("score", 1), ("iou", 1), ("reg", 2)]
    keys = jax.random.split(key, len(specs))
    heads = {}
    for k_h, (name, d_out) in zip(keys, specs):
        k1, k2, k3, k4, k5, k6 = jax.random.split(k_h, 6)
        s1 = 1.0 / np.sqrt(in_dim)
        s2 = 1.0 / np.sqrt(C)
        heads[name] = {
            "w1": jax.random.uniform(k1, (C, in_dim), jnp.float32, -s1, s1),
            "b1": jax.random.uniform(k2, (C,), jnp.float32, -s1, s1),
            "gamma": 1.0 + 0.1 * jax.random.normal(k3, (C,), jnp.float32),
            "beta": 0.1 * jax.random.normal(k4, (C,), jnp.float32),
            "w2": jax.random.uniform(k5, (d_out, C), jnp.float32, -s2, s2),
            "b2": jax.random.uniform(k6, (d_out,), jnp.float32, -s2, s2),
        }
    return heads


def pack_params(heads):
    """Pack the 3 heads into the fused-kernel layout (done once, host-side)."""
    C = heads["score"]["w1"].shape[0]
    order = ["score", "iou", "reg"]

    # Stacked first-layer weight, pre-split into the obj / global column halves
    # (cat order in the PyTorch forward is [feature_obj, feature_global]).
    w1a = jnp.concatenate([heads[n]["w1"][:, :C] for n in order], axis=0).astype(jnp.bfloat16)
    w1b = jnp.concatenate([heads[n]["w1"][:, C:] for n in order], axis=0).astype(jnp.bfloat16)
    b1 = jnp.concatenate([heads[n]["b1"] for n in order], axis=0)[:, None]       # (3C, 1) f32
    gamma = jnp.concatenate([heads[n]["gamma"] for n in order], axis=0)[:, None]  # (3C, 1) f32
    beta = jnp.concatenate([heads[n]["beta"] for n in order], axis=0)[:, None]    # (3C, 1) f32

    # Per-head column blocks of the block-diagonal second-layer weight: (3, 4, C).
    w2 = jnp.zeros((NUM_HEADS, OUT_ROWS, C), jnp.float32)
    w2 = w2.at[0, 0:1, :].set(heads["score"]["w2"])
    w2 = w2.at[1, 1:2, :].set(heads["iou"]["w2"])
    w2 = w2.at[2, 2:4, :].set(heads["reg"]["w2"])
    w2 = w2.astype(jnp.bfloat16)
    b2 = jnp.concatenate([heads["score"]["b2"], heads["iou"]["b2"],
                          heads["reg"]["b2"]], axis=0)[:, None]                   # (4, 1) f32

    return {"w1a": w1a, "w1b": w1b, "b1": b1, "gamma": gamma, "beta": beta,
            "w2": w2, "b2": b2}


# ----------------------------------------------------------------------------
# Pure-JAX reference (mirrors the PyTorch module at eval time), full f32
# ----------------------------------------------------------------------------
def _mlp_head_ref(x, p):
    h = jnp.matmul(x, p["w1"].T, precision=lax.Precision.HIGHEST) + p["b1"]
    mu = jnp.mean(h, axis=-1, keepdims=True)
    var = jnp.mean(jnp.square(h - mu), axis=-1, keepdims=True)
    h = (h - mu) * lax.rsqrt(var + EPS) * p["gamma"] + p["beta"]
    h = jnp.maximum(h, 0.0)
    return jnp.matmul(h, p["w2"].T, precision=lax.Precision.HIGHEST) + p["b2"]


def reference_forward(feature_global, feature_obj, heads):
    x = jnp.transpose(jnp.concatenate([feature_obj, feature_global], axis=1), (0, 2, 1))
    score = jax.nn.sigmoid(_mlp_head_ref(x, heads["score"])[..., 0])
    iou = jax.nn.sigmoid(_mlp_head_ref(x, heads["iou"])[..., 0])
    reg = _mlp_head_ref(x, heads["reg"])
    return score, reg, iou


# ----------------------------------------------------------------------------
if __name__ == "__main__":
    B, C, T = 2, 32, 16        # batch, model_dim, temporal length

    key = jax.random.PRNGKey(0)
    kg, ko, kp = jax.random.split(key, 3)
    feature_global = jax.random.normal(kg, (B, C, T), jnp.float32)
    feature_obj = jax.random.normal(ko, (B, C, T), jnp.float32)

    heads = init_params(kp, C)
    packed = pack_params(heads)

    out = temporal_decoder_regression_forward(feature_global, feature_obj, packed)
    jax.block_until_ready(out)

    assert out["temporal_score"].shape == (B, T), out["temporal_score"].shape
    assert out["temporal_reg"].shape == (B, T, 2), out["temporal_reg"].shape
    assert out["temporal_iou"].shape == (B, T), out["temporal_iou"].shape
    for v in out.values():
        assert bool(jnp.all(jnp.isfinite(v)))

    # Kernel uses bf16 MXU operands (f32 accumulation); reference is full f32 HIGHEST,
    # so compare at bf16-appropriate tolerance.
    ref_score, ref_reg, ref_iou = reference_forward(feature_global, feature_obj, heads)
    np.testing.assert_allclose(np.asarray(out["temporal_score"]), np.asarray(ref_score),
                               rtol=1e-2, atol=1e-2)
    np.testing.assert_allclose(np.asarray(out["temporal_iou"]), np.asarray(ref_iou),
                               rtol=1e-2, atol=1e-2)
    np.testing.assert_allclose(np.asarray(out["temporal_reg"]), np.asarray(ref_reg),
                               rtol=1e-2, atol=1e-2)

    print("KERNEL_OK")
</pallas_src>

<mosaic_0001>
module attributes {stable_mosaic.version = 11 : i64} {
  func.func @decoder_kernel(%arg0: i32, %arg1: memref<32x32xbf16, #tpu.memory_space<vmem>>, %arg2: memref<32x32xbf16, #tpu.memory_space<vmem>>, %arg3: memref<96x32xbf16, #tpu.memory_space<vmem>>, %arg4: memref<96x32xbf16, #tpu.memory_space<vmem>>, %arg5: memref<96x1xf32, #tpu.memory_space<vmem>>, %arg6: memref<96x1xf32, #tpu.memory_space<vmem>>, %arg7: memref<96x1xf32, #tpu.memory_space<vmem>>, %arg8: memref<3x4x32xbf16, #tpu.memory_space<vmem>>, %arg9: memref<4x1xf32, #tpu.memory_space<vmem>>, %arg10: memref<4x32xf32, #tpu.memory_space<vmem>>) attributes {dimension_semantics = [#tpu.dimension_semantics<arbitrary>], iteration_bounds = array<i64: 1>, scalar_prefetch = 0 : i64, scratch_operands = 0 : i64, tpu.core_type = #tpu.core_type<tc>, window_params = [{pipeline_mode = #tpu.pipeline_mode<synchronous>, transform_indices = @transform_0, window_bounds = array<i64: 32, 32>}, {pipeline_mode = #tpu.pipeline_mode<synchronous>, transform_indices = @transform_1, window_bounds = array<i64: 32, 32>}, {pipeline_mode = #tpu.pipeline_mode<synchronous>, transform_indices = @transform_2, window_bounds = array<i64: 96, 32>}, {pipeline_mode = #tpu.pipeline_mode<synchronous>, transform_indices = @transform_3, window_bounds = array<i64: 96, 32>}, {pipeline_mode = #tpu.pipeline_mode<synchronous>, transform_indices = @transform_4, window_bounds = array<i64: 96, 1>}, {pipeline_mode = #tpu.pipeline_mode<synchronous>, transform_indices = @transform_5, window_bounds = array<i64: 96, 1>}, {pipeline_mode = #tpu.pipeline_mode<synchronous>, transform_indices = @transform_6, window_bounds = array<i64: 96, 1>}, {pipeline_mode = #tpu.pipeline_mode<synchronous>, transform_indices = @transform_7, window_bounds = array<i64: 3, 4, 32>}, {pipeline_mode = #tpu.pipeline_mode<synchronous>, transform_indices = @transform_8, window_bounds = array<i64: 4, 1>}, {pipeline_mode = #tpu.pipeline_mode<synchronous>, transform_indices = @transform_9, window_bounds = array<i64: 4, 32>}]} {
    %c0 = arith.constant 0 : index
    %c0_0 = arith.constant 0 : index
    %0 = vector.load %arg3[%c0, %c0_0] : memref<96x32xbf16, #tpu.memory_space<vmem>>, vector<96x32xbf16>
    %c0_1 = arith.constant 0 : index
    %c0_2 = arith.constant 0 : index
    %1 = vector.load %arg1[%c0_1, %c0_2] : memref<32x32xbf16, #tpu.memory_space<vmem>>, vector<32x32xbf16>
    %cst = arith.constant dense<0.000000e+00> : vector<96x32xf32>
    %2 = tpu.matmul %0, %1, %cst {dimension_numbers = #tpu.dot_dimension_numbers<[1], [0], [0], [1], [0, 0, 1, 1], [], []>} : vector<96x32xbf16>, vector<32x32xbf16>, vector<96x32xf32> -> vector<96x32xf32>
    %c0_3 = arith.constant 0 : index
    %c0_4 = arith.constant 0 : index
    %3 = vector.load %arg4[%c0_3, %c0_4] : memref<96x32xbf16, #tpu.memory_space<vmem>>, vector<96x32xbf16>
    %c0_5 = arith.constant 0 : index
    %c0_6 = arith.constant 0 : index
    %4 = vector.load %arg2[%c0_5, %c0_6] : memref<32x32xbf16, #tpu.memory_space<vmem>>, vector<32x32xbf16>
    %cst_7 = arith.constant dense<0.000000e+00> : vector<96x32xf32>
    %5 = tpu.matmul %3, %4, %cst_7 {dimension_numbers = #tpu.dot_dimension_numbers<[1], [0], [0], [1], [0, 0, 1, 1], [], []>} : vector<96x32xbf16>, vector<32x32xbf16>, vector<96x32xf32> -> vector<96x32xf32>
    %6 = arith.addf %2, %5 : vector<96x32xf32>
    %c0_8 = arith.constant 0 : index
    %c0_9 = arith.constant 0 : index
    %7 = vector.load %arg5[%c0_8, %c0_9] : memref<96x1xf32, #tpu.memory_space<vmem>>, vector<96x1xf32>
    %8 = vector.broadcast %7 : vector<96x1xf32> to vector<96x32xf32>
    %9 = arith.addf %6, %8 : vector<96x32xf32>
    %c0_10 = arith.constant 0 : index
    %c0_11 = arith.constant 0 : index
    %10 = vector.load %arg6[%c0_10, %c0_11] : memref<96x1xf32, #tpu.memory_space<vmem>>, vector<96x1xf32>
    %c0_12 = arith.constant 0 : index
    %c0_13 = arith.constant 0 : index
    %11 = vector.load %arg7[%c0_12, %c0_13] : memref<96x1xf32, #tpu.memory_space<vmem>>, vector<96x1xf32>
    %cst_14 = arith.constant 0.000000e+00 : f32
    %12 = vector.broadcast %cst_14 : f32 to vector<4x32xf32>
    %13 = vector.extract_strided_slice %9 {offsets = [0, 0], sizes = [32, 32], strides = [1, 1]} : vector<96x32xf32> to vector<32x32xf32>
    %cst_15 = arith.constant dense<0.000000e+00> : vector<32xf32>
    %14 = vector.multi_reduction <add>, %13, %cst_15 [0] : vector<32x32xf32> to vector<32xf32>
    %15 = vector.shape_cast %14 : vector<32xf32> to vector<1x32xf32>
    %cst_16 = arith.constant 3.200000e+01 : f32
    %16 = vector.broadcast %cst_16 : f32 to vector<1x32xf32>
    %17 = arith.divf %15, %16 : vector<1x32xf32>
    %18 = vector.broadcast %17 : vector<1x32xf32> to vector<32x32xf32>
    %19 = arith.subf %13, %18 : vector<32x32xf32>
    %20 = arith.mulf %19, %19 : vector<32x32xf32>
    %cst_17 = arith.constant dense<0.000000e+00> : vector<32xf32>
    %21 = vector.multi_reduction <add>, %20, %cst_17 [0] : vector<32x32xf32> to vector<32xf32>
    %22 = vector.shape_cast %21 : vector<32xf32> to vector<1x32xf32>
    %cst_18 = arith.constant 3.200000e+01 : f32
    %23 = vector.broadcast %cst_18 : f32 to vector<1x32xf32>
    %24 = arith.divf %22, %23 : vector<1x32xf32>
    %cst_19 = arith.constant 9.99999974E-6 : f32
    %25 = vector.broadcast %cst_19 : f32 to vector<1x32xf32>
    %26 = arith.addf %24, %25 : vector<1x32xf32>
    %27 = math.rsqrt %26 : vector<1x32xf32>
    %28 = vector.broadcast %27 : vector<1x32xf32> to vector<32x32xf32>
    %29 = arith.mulf %19, %28 : vector<32x32xf32>
    %30 = vector.extract_strided_slice %10 {offsets = [0, 0], sizes = [32, 1], strides = [1, 1]} : vector<96x1xf32> to vector<32x1xf32>
    %31 = vector.broadcast %30 : vector<32x1xf32> to vector<32x32xf32>
    %32 = arith.mulf %29, %31 : vector<32x32xf32>
    %33 = vector.extract_strided_slice %11 {offsets = [0, 0], sizes = [32, 1], strides = [1, 1]} : vector<96x1xf32> to vector<32x1xf32>
    %34 = vector.broadcast %33 : vector<32x1xf32> to vector<32x32xf32>
    %35 = arith.addf %32, %34 : vector<32x32xf32>
    %cst_20 = arith.constant 0.000000e+00 : f32
    %36 = vector.broadcast %cst_20 : f32 to vector<32x32xf32>
    %37 = arith.maximumf %35, %36 : vector<32x32xf32>
    %38 = arith.truncf %37 : vector<32x32xf32> to vector<32x32xbf16>
    %c0_21 = arith.constant 0 : index
    %c0_22 = arith.constant 0 : index
    %c0_23 = arith.constant 0 : index
    %39 = vector.load %arg8[%c0_21, %c0_22, %c0_23] : memref<3x4x32xbf16, #tpu.memory_space<vmem>>, vector<1x4x32xbf16>
    %40 = vector.shape_cast %39 : vector<1x4x32xbf16> to vector<4x32xbf16>
    %cst_24 = arith.constant dense<0.000000e+00> : vector<4x32xf32>
    %41 = tpu.matmul %40, %38, %cst_24 {dimension_numbers = #tpu.dot_dimension_numbers<[1], [0], [0], [1], [0, 0, 1, 1], [], []>} : vector<4x32xbf16>, vector<32x32xbf16>, vector<4x32xf32> -> vector<4x32xf32>
    %42 = arith.addf %12, %41 : vector<4x32xf32>
    %43 = vector.extract_strided_slice %9 {offsets = [32, 0], sizes = [32, 32], strides = [1, 1]} : vector<96x32xf32> to vector<32x32xf32>
    %cst_25 = arith.constant dense<0.000000e+00> : vector<32xf32>
    %44 = vector.multi_reduction <add>, %43, %cst_25 [0] : vector<32x32xf32> to vector<32xf32>
    %45 = vector.shape_cast %44 : vector<32xf32> to vector<1x32xf32>
    %cst_26 = arith.constant 3.200000e+01 : f32
    %46 = vector.broadcast %cst_26 : f32 to vector<1x32xf32>
    %47 = arith.divf %45, %46 : vector<1x32xf32>
    %48 = vector.broadcast %47 : vector<1x32xf32> to vector<32x32xf32>
    %49 = arith.subf %43, %48 : vector<32x32xf32>
    %50 = arith.mulf %49, %49 : vector<32x32xf32>
    %cst_27 = arith.constant dense<0.000000e+00> : vector<32xf32>
    %51 = vector.multi_reduction <add>, %50, %cst_27 [0] : vector<32x32xf32> to vector<32xf32>
    %52 = vector.shape_cast %51 : vector<32xf32> to vector<1x32xf32>
    %cst_28 = arith.constant 3.200000e+01 : f32
    %53 = vector.broadcast %cst_28 : f32 to vector<1x32xf32>
    %54 = arith.divf %52, %53 : vector<1x32xf32>
    %cst_29 = arith.constant 9.99999974E-6 : f32
    %55 = vector.broadcast %cst_29 : f32 to vector<1x32xf32>
    %56 = arith.addf %54, %55 : vector<1x32xf32>
    %57 = math.rsqrt %56 : vector<1x32xf32>
    %58 = vector.broadcast %57 : vector<1x32xf32> to vector<32x32xf32>
    %59 = arith.mulf %49, %58 : vector<32x32xf32>
    %60 = vector.extract_strided_slice %10 {offsets = [32, 0], sizes = [32, 1], strides = [1, 1]} : vector<96x1xf32> to vector<32x1xf32>
    %61 = vector.broadcast %60 : vector<32x1xf32> to vector<32x32xf32>
    %62 = arith.mulf %59, %61 : vector<32x32xf32>
    %63 = vector.extract_strided_slice %11 {offsets = [32, 0], sizes = [32, 1], strides = [1, 1]} : vector<96x1xf32> to vector<32x1xf32>
    %64 = vector.broadcast %63 : vector<32x1xf32> to vector<32x32xf32>
    %65 = arith.addf %62, %64 : vector<32x32xf32>
    %cst_30 = arith.constant 0.000000e+00 : f32
    %66 = vector.broadcast %cst_30 : f32 to vector<32x32xf32>
    %67 = arith.maximumf %65, %66 : vector<32x32xf32>
    %68 = arith.truncf %67 : vector<32x32xf32> to vector<32x32xbf16>
    %c1 = arith.constant 1 : index
    %c0_31 = arith.constant 0 : index
    %c0_32 = arith.constant 0 : index
    %69 = vector.load %arg8[%c1, %c0_31, %c0_32] : memref<3x4x32xbf16, #tpu.memory_space<vmem>>, vector<1x4x32xbf16>
    %70 = vector.shape_cast %69 : vector<1x4x32xbf16> to vector<4x32xbf16>
    %cst_33 = arith.constant dense<0.000000e+00> : vector<4x32xf32>
    %71 = tpu.matmul %70, %68, %cst_33 {dimension_numbers = #tpu.dot_dimension_numbers<[1], [0], [0], [1], [0, 0, 1, 1], [], []>} : vector<4x32xbf16>, vector<32x32xbf16>, vector<4x32xf32> -> vector<4x32xf32>
    %72 = arith.addf %42, %71 : vector<4x32xf32>
    %73 = vector.extract_strided_slice %9 {offsets = [64, 0], sizes = [32, 32], strides = [1, 1]} : vector<96x32xf32> to vector<32x32xf32>
    %cst_34 = arith.constant dense<0.000000e+00> : vector<32xf32>
    %74 = vector.multi_reduction <add>, %73, %cst_34 [0] : vector<32x32xf32> to vector<32xf32>
    %75 = vector.shape_cast %74 : vector<32xf32> to vector<1x32xf32>
    %cst_35 = arith.constant 3.200000e+01 : f32
    %76 = vector.broadcast %cst_35 : f32 to vector<1x32xf32>
    %77 = arith.divf %75, %76 : vector<1x32xf32>
    %78 = vector.broadcast %77 : vector<1x32xf32> to vector<32x32xf32>
    %79 = arith.subf %73, %78 : vector<32x32xf32>
    %80 = arith.mulf %79, %79 : vector<32x32xf32>
    %cst_36 = arith.constant dense<0.000000e+00> : vector<32xf32>
    %81 = vector.multi_reduction <add>, %80, %cst_36 [0] : vector<32x32xf32> to vector<32xf32>
    %82 = vector.shape_cast %81 : vector<32xf32> to vector<1x32xf32>
    %cst_37 = arith.constant 3.200000e+01 : f32
    %83 = vector.broadcast %cst_37 : f32 to vector<1x32xf32>
    %84 = arith.divf %82, %83 : vector<1x32xf32>
    %cst_38 = arith.constant 9.99999974E-6 : f32
    %85 = vector.broadcast %cst_38 : f32 to vector<1x32xf32>
    %86 = arith.addf %84, %85 : vector<1x32xf32>
    %87 = math.rsqrt %86 : vector<1x32xf32>
    %88 = vector.broadcast %87 : vector<1x32xf32> to vector<32x32xf32>
    %89 = arith.mulf %79, %88 : vector<32x32xf32>
    %90 = vector.extract_strided_slice %10 {offsets = [64, 0], sizes = [32, 1], strides = [1, 1]} : vector<96x1xf32> to vector<32x1xf32>
    %91 = vector.broadcast %90 : vector<32x1xf32> to vector<32x32xf32>
    %92 = arith.mulf %89, %91 : vector<32x32xf32>
    %93 = vector.extract_strided_slice %11 {offsets = [64, 0], sizes = [32, 1], strides = [1, 1]} : vector<96x1xf32> to vector<32x1xf32>
    %94 = vector.broadcast %93 : vector<32x1xf32> to vector<32x32xf32>
    %95 = arith.addf %92, %94 : vector<32x32xf32>
    %cst_39 = arith.constant 0.000000e+00 : f32
    %96 = vector.broadcast %cst_39 : f32 to vector<32x32xf32>
    %97 = arith.maximumf %95, %96 : vector<32x32xf32>
    %98 = arith.truncf %97 : vector<32x32xf32> to vector<32x32xbf16>
    %c2 = arith.constant 2 : index
    %c0_40 = arith.constant 0 : index
    %c0_41 = arith.constant 0 : index
    %99 = vector.load %arg8[%c2, %c0_40, %c0_41] : memref<3x4x32xbf16, #tpu.memory_space<vmem>>, vector<1x4x32xbf16>
    %100 = vector.shape_cast %99 : vector<1x4x32xbf16> to vector<4x32xbf16>
    %cst_42 = arith.constant dense<0.000000e+00> : vector<4x32xf32>
    %101 = tpu.matmul %100, %98, %cst_42 {dimension_numbers = #tpu.dot_dimension_numbers<[1], [0], [0], [1], [0, 0, 1, 1], [], []>} : vector<4x32xbf16>, vector<32x32xbf16>, vector<4x32xf32> -> vector<4x32xf32>
    %102 = arith.addf %72, %101 : vector<4x32xf32>
    %c0_43 = arith.constant 0 : index
    %c0_44 = arith.constant 0 : index
    %103 = vector.load %arg9[%c0_43, %c0_44] : memref<4x1xf32, #tpu.memory_space<vmem>>, vector<4x1xf32>
    %104 = vector.broadcast %103 : vector<4x1xf32> to vector<4x32xf32>
    %105 = arith.addf %102, %104 : vector<4x32xf32>
    %106 = arith.negf %105 : vector<4x32xf32>
    %107 = math.exp %106 : vector<4x32xf32>
    %cst_45 = arith.constant 1.000000e+00 : f32
    %108 = vector.broadcast %cst_45 : f32 to vector<4x32xf32>
    %109 = arith.addf %108, %107 : vector<4x32xf32>
    %110 = arith.divf %108, %109 : vector<4x32xf32>
    %111 = tpu.iota {dimensions = array<i32: 0>} : vector<4x32xi32>
    %c2_i32 = arith.constant 2 : i32
    %112 = vector.broadcast %c2_i32 : i32 to vector<4x32xi32>
    %113 = arith.cmpi slt, %111, %112 : vector<4x32xi32>
    %114 = arith.select %113, %110, %105 : vector<4x32xi1>, vector<4x32xf32>
    %c0_46 = arith.constant 0 : index
    %c0_47 = arith.constant 0 : index
    %115 = vector.load %arg10[%c0_46, %c0_47] : memref<4x32xf32, #tpu.memory_space<vmem>>, vector<4x32xf32>
    tpu.vector_store %arg10[%c0_46, %c0_47], %114 {strides = array<i32>} : memref<4x32xf32, #tpu.memory_space<vmem>>, vector<4x32xf32>,
    return
  }
  func.func @transform_0(%arg0: i32) -> (i32, i32) {
    %c0_i32 = arith.constant 0 : i32
    %c0_i32_0 = arith.constant 0 : i32
    %c0_i32_1 = arith.constant 0 : i32
    return %c0_i32, %c0_i32_0 : i32, i32
  }
  func.func @transform_1(%arg0: i32) -> (i32, i32) {
    %c0_i32 = arith.constant 0 : i32
    %c0_i32_0 = arith.constant 0 : i32
    %c0_i32_1 = arith.constant 0 : i32
    return %c0_i32, %c0_i32_0 : i32, i32
  }
  func.func @transform_2(%arg0: i32) -> (i32, i32) {
    %c0_i32 = arith.constant 0 : i32
    %c0_i32_0 = arith.constant 0 : i32
    %c0_i32_1 = arith.constant 0 : i32
    return %c0_i32, %c0_i32_0 : i32, i32
  }
  func.func @transform_3(%arg0: i32) -> (i32, i32) {
    %c0_i32 = arith.constant 0 : i32
    %c0_i32_0 = arith.constant 0 : i32
    %c0_i32_1 = arith.constant 0 : i32
    return %c0_i32, %c0_i32_0 : i32, i32
  }
  func.func @transform_4(%arg0: i32) -> (i32, i32) {
    %c0_i32 = arith.constant 0 : i32
    %c0_i32_0 = arith.constant 0 : i32
    %c0_i32_1 = arith.constant 0 : i32
    return %c0_i32, %c0_i32_0 : i32, i32
  }
  func.func @transform_5(%arg0: i32) -> (i32, i32) {
    %c0_i32 = arith.constant 0 : i32
    %c0_i32_0 = arith.constant 0 : i32
    %c0_i32_1 = arith.constant 0 : i32
    return %c0_i32, %c0_i32_0 : i32, i32
  }
  func.func @transform_6(%arg0: i32) -> (i32, i32) {
    %c0_i32 = arith.constant 0 : i32
    %c0_i32_0 = arith.constant 0 : i32
    %c0_i32_1 = arith.constant 0 : i32
    return %c0_i32, %c0_i32_0 : i32, i32
  }
  func.func @transform_7(%arg0: i32) -> (i32, i32, i32) {
    %c0_i32 = arith.constant 0 : i32
    %c0_i32_0 = arith.constant 0 : i32
    %c0_i32_1 = arith.constant 0 : i32
    %c0_i32_2 = arith.constant 0 : i32
    return %c0_i32, %c0_i32_0, %c0_i32_1 : i32, i32, i32
  }
  func.func @transform_8(%arg0: i32) -> (i32, i32) {
    %c0_i32 = arith.constant 0 : i32
    %c0_i32_0 = arith.constant 0 : i32
    %c0_i32_1 = arith.constant 0 : i32
    return %c0_i32, %c0_i32_0 : i32, i32
  }
  func.func @transform_9(%arg0: i32) -> (i32, i32) {
    %c0_i32 = arith.constant 0 : i32
    %c0_i32_0 = arith.constant 0 : i32
    %c0_i32_1 = arith.constant 0 : i32
    return %c0_i32, %c0_i32_0 : i32, i32
  }
}

</mosaic_0001>

<bundles_post_ra>
// kernel: tpu_custom_call.1
= control target key start
LH: loop header
LB: loop body
LE: loop exit
PB: predicated region body
PF: predicated region fallthrough
CT: control target
= control target key end

     0   :  { %v1083_v3 = vmov 0   ;;  %vm108_vm0 = vcmask 261120   ;;  %s1509_s0 = inlined_call_operand.vmem [shape: bf16[32,32], index: 0, kind: input, shape index: {}]   ;;  %s1510_s1 = inlined_call_operand.vmem [shape: bf16[32,32], index: 1, kind: input, shape index: {}]   ;;  %s1511_s2 = inlined_call_operand.vmem [shape: bf16[96,32], index: 2, kind: input, shape index: {}]   ;;  %s1512_s3 = inlined_call_operand.vmem [shape: bf16[96,32], index: 3, kind: input, shape index: {}]   ;;  %s1513_s4 = inlined_call_operand.vmem [shape: f32[96,1], index: 4, kind: input, shape index: {}]   ;;  %s1514_s5 = inlined_call_operand.vmem [shape: f32[96,1], index: 5, kind: input, shape index: {}]   ;;  %s1515_s6 = inlined_call_operand.vmem [shape: f32[96,1], index: 6, kind: input, shape index: {}]   ;;  %s1516_s7 = inlined_call_operand.vmem [shape: bf16[3,4,32], index: 7, kind: input, shape index: {}]   ;;  %s1517_s8 = inlined_call_operand.vmem [shape: f32[4,1], index: 8, kind: input, shape index: {}]   ;;  %s1518_s9 = inlined_call_operand.hbm [shape: f32[4,32], index: 9, kind: output, shape index: {}]  }
   0x1   :  { %v1035_v0 = vld [vmem:[%s1510_s1 + $0x8] sm:$0xff]   ;;  %v1037_v2 = vld [vmem:[%s1510_s1] sm:$0xff]   ;;  %1033 = vset.pattern.permute.xlu0 %v1083_v3  ;;  %1034 = vset.pattern.permute.xlu1 %v1083_v3  ;;  %v1043_v9 = vld [vmem:[%s1512_s3 + $0x10] sm:$0xff]  }
   0x2   :  { %v1036_v1 = vld [vmem:[%s1509_s0 + $0x8] sm:$0xff]   ;;  %973 = vmatprep.subr.bf16.mxu0 %v1035_v0  ;;  %v1038_v4 = vld [vmem:[%s1509_s0] sm:$0xff]   ;;  %v1044_v10 = vld [vmem:[%s1511_s2 + $0x10] sm:$0xff]  }
   0x3   :  { %989 = vmatprep.subr.bf16.mxu1 %v1036_v1  ;;  %974 = vmatpush3.bf16.msra.mxu0 %v1035_v0  ;;  %v1039_v5 = vld [vmem:[%s1512_s3] sm:$0xff]   ;;  %v1041_v7 = vld [vmem:[%s1512_s3 + $0x8] sm:$0xff]   ;;  %v1045_v11 = vld [vmem:[%s1512_s3 + $0x18] sm:$0xff]  }
   0x4   :  { %990 = vmatpush3.bf16.msra.mxu1 %v1036_v1  ;;  %975 = vmatprep.subr.bf16.mxu0 %v1037_v2  ;;  %v1040_v6 = vld [vmem:[%s1511_s2] sm:$0xff]   ;;  %v1042_v8 = vld [vmem:[%s1511_s2 + $0x8] sm:$0xff]   ;;  %v355_v13 = vld [vmem:[%s1513_s4 + $0x30] sm:$0xff] }
   0x5   :  { %991 = vmatprep.subr.bf16.mxu1 %v1038_v4  ;;  %977 = vmatprep.mubr.msk.bf16.mxu0 %vm108_vm0, %v1039_v5  ;;  %v353_v12 = vld [vmem:[%s1513_s4 + $0x20] sm:$0xff]  ;;  %v1046_v14 = vld [vmem:[%s1511_s2 + $0x18] sm:$0xff]   ;;  %v354_v15 = vld [vmem:[%s1513_s4 + $0x28] sm:$0xff] }
   0x6   :  { %993 = vmatprep.mubr.msk.bf16.mxu1 %vm108_vm0, %v1040_v6  ;;  %383 = vperm.xlu0 %1033, %v353_v12   ;;  %v356_v16 = vld [vmem:[%s1513_s4 + $0x38] sm:$0xff]  ;;  %v1047_v17 = vld [vmem:[%s1512_s3 + $0x20] sm:$0xff]   ;;  %v350_v20 = vld [vmem:[%s1513_s4 + $0x8] sm:$0xff] }
   0x7   :  { %976 = vmatpush3.bf16.msra.mxu0 %v1037_v2  ;;  %393 = vperm.xlu1 %1034, %v355_v13   ;;  %v1048_v18 = vld [vmem:[%s1511_s2 + $0x20] sm:$0xff]   ;;  %v1049_v21 = vld [vmem:[%s1512_s3 + $0x28] sm:$0xff]   ;;  %v351_v22 = vld [vmem:[%s1513_s4 + $0x10] sm:$0xff] }
   0x8   :  { %992 = vmatpush3.bf16.msra.mxu1 %v1038_v4  ;;  %v349_v19 = vld [vmem:[%s1513_s4] sm:$0xff]  ;;  %v1050_v24 = vld [vmem:[%s1511_s2 + $0x28] sm:$0xff]   ;;  %v352_v26 = vld [vmem:[%s1513_s4 + $0x18] sm:$0xff] }
   0x9   :  { %v357_v23 = vld [vmem:[%s1513_s4 + $0x40] sm:$0xff]  ;;  %v358_v25 = vld [vmem:[%s1513_s4 + $0x48] sm:$0xff] }
   0xa   :  { %978 = vmatmul.mubr.msk.bf16.vlgmr.msra.gmra.mxu0 %vm108_vm0, %v1041_v7  ;;  %388 = vperm.xlu0 %1033, %v354_v15  }
   0xb   :  { %994 = vmatmul.mubr.msk.bf16.vlgmr.msra.gmra.mxu1 %vm108_vm0, %v1042_v8  ;;  %981 = vmatprep.mubr.msk.bf16.mxu0 %vm108_vm0, %v1043_v9 }
   0xc   :  { %997 = vmatprep.mubr.msk.bf16.mxu1 %vm108_vm0, %v1044_v10  ;;  %398 = vperm.xlu1 %1034, %v356_v16  }
   0xe   :  { %363 = vperm.xlu0 %1033, %v349_v19  }
  0x10   :  { %368 = vperm.xlu1 %1034, %v350_v20  }
  0x12   :  { %982 = vmatmul.mubr.msk.bf16.gmra.mxu0 %vm108_vm0, %v1045_v11  ;;  %373 = vperm.xlu0 %1033, %v351_v22  }
  0x13   :  { %998 = vmatmul.mubr.msk.bf16.gmra.mxu1 %vm108_vm0, %v1046_v14  ;;  %985 = vmatprep.mubr.msk.bf16.mxu0 %vm108_vm0, %v1047_v17 }
  0x14   :  { %1001 = vmatprep.mubr.msk.bf16.mxu1 %vm108_vm0, %v1048_v18  ;;  %403 = vperm.xlu1 %1034, %v357_v23  }
  0x1a   :  { %986 = vmatmul.mubr.msk.bf16.gmra.mxu0 %vm108_vm0, %v1049_v21 }
  0x1b   :  { %1002 = vmatmul.mubr.msk.bf16.gmra.mxu1 %vm108_vm0, %v1050_v24 }
  0x1c   :  { %14 = vsyncpa [#allocation3], 0  ;;  %408 = vperm.xlu0 %1033, %v358_v25   ;;  %378 = vperm.xlu1 %1034, %v352_v26   ;;  %v359_v27 = vld [vmem:[%s1513_s4 + $0x50] sm:$0xff]  ;;  %v360_v28 = vld [vmem:[%s1513_s4 + $0x58] sm:$0xff]  ;;  %v1084_v54 = vmov 0.0   ;;  %vm1085_vm1 = vmmov 0  }
  0x1d   :  { %v439_v29 = vld [vmem:[%s1514_s5 + $0x30] sm:$0xff]  ;;  %v440_v30 = vld [vmem:[%s1514_s5 + $0x38] sm:$0xff]  ;;  %v437_v33 = vld [vmem:[%s1514_s5 + $0x20] sm:$0xff]  ;;  %1013 = vmatprep.subr.bf16.mxu1 %v1084_v54  ;;  %1005 = vmatprep.subr.bf16.mxu0 %v1084_v54  ;;  %vm898_vm3 = vcmask 257024  }
  0x1e   :  { %v451_v31 = vld [vmem:[%s1515_s6 + $0x30] sm:$0xff]  ;;  %v452_v32 = vld [vmem:[%s1515_s6 + $0x38] sm:$0xff]  ;;  %v438_v34 = vld [vmem:[%s1514_s5 + $0x28] sm:$0xff]  ;;  %1009 = vmatprep.mubr.msk.bf16.mxu0 %vm1085_vm1, %v1084_v54  ;;  %1017 = vmatprep.mubr.msk.bf16.mxu1 %vm1085_vm1, %v1084_v54 }
  0x1f   :  { %v435_v35 = vld [vmem:[%s1514_s5 + $0x10] sm:$0xff]  ;;  %v436_v36 = vld [vmem:[%s1514_s5 + $0x18] sm:$0xff]  ;;  %v449_v37 = vld [vmem:[%s1515_s6 + $0x20] sm:$0xff] }
  0x20   :  { %413 = vperm.xlu0 %1033, %v359_v27   ;;  %418 = vperm.xlu1 %1034, %v360_v28   ;;  %v450_v38 = vld [vmem:[%s1515_s6 + $0x28] sm:$0xff]  ;;  %v447_v39 = vld [vmem:[%s1515_s6 + $0x10] sm:$0xff]  ;;  %v448_v40 = vld [vmem:[%s1515_s6 + $0x18] sm:$0xff] }
  0x21   :  { %v443_v41 = vld [vmem:[%s1514_s5 + $0x50] sm:$0xff]  ;;  %v444_v42 = vld [vmem:[%s1514_s5 + $0x58] sm:$0xff]  ;;  %v433_v43 = vld [vmem:[%s1514_s5] sm:$0xff] }
  0x22   :  { %v434_v44 = vld [vmem:[%s1514_s5 + $0x8] sm:$0xff]  ;;  %v455_v45 = vld [vmem:[%s1515_s6 + $0x50] sm:$0xff]  ;;  %v456_v46 = vld [vmem:[%s1515_s6 + $0x58] sm:$0xff] }
  0x23   :  { %v445_v47 = vld [vmem:[%s1515_s6] sm:$0xff]  ;;  %v446_v48 = vld [vmem:[%s1515_s6 + $0x8] sm:$0xff] }
  0x24   :  { %609 = vperm.xlu0 %1033, %v439_v29   ;;  %614 = vperm.xlu1 %1034, %v440_v30   ;;  %v441_v49 = vld [vmem:[%s1514_s5 + $0x40] sm:$0xff]  ;;  %v442_v50 = vld [vmem:[%s1514_s5 + $0x48] sm:$0xff] }
  0x25   :  { %v453_v51 = vld [vmem:[%s1515_s6 + $0x40] sm:$0xff]  ;;  %v454_v52 = vld [vmem:[%s1515_s6 + $0x48] sm:$0xff] }
  0x26   :  { %v881_v53 = vld [vmem:[%s1517_s8] sm:$0xf] }
  0x28   :  { %633 = vperm.xlu0 %1033, %v451_v31   ;;  %638 = vperm.xlu1 %1034, %v452_v32  }
  0x2c   :  { %599 = vperm.xlu0 %1033, %v437_v33   ;;  %604 = vperm.xlu1 %1034, %v438_v34  }
  0x30   :  { %512 = vperm.xlu0 %1033, %v435_v35   ;;  %517 = vperm.xlu1 %1034, %v436_v36  }
  0x34   :  { %623 = vperm.xlu0 %1033, %v449_v37   ;;  %628 = vperm.xlu1 %1034, %v450_v38  }
  0x38   :  { %536 = vperm.xlu0 %1033, %v447_v39   ;;  %541 = vperm.xlu1 %1034, %v448_v40  }
  0x3c   :  { %793 = vperm.xlu0 %1033, %v443_v41   ;;  %798 = vperm.xlu1 %1034, %v444_v42  }
  0x40   :  { %502 = vperm.xlu0 %1033, %v433_v43   ;;  %507 = vperm.xlu1 %1034, %v434_v44  }
  0x44   :  { %817 = vperm.xlu0 %1033, %v455_v45   ;;  %822 = vperm.xlu1 %1034, %v456_v46  }
  0x48   :  { %526 = vperm.xlu0 %1033, %v445_v47   ;;  %531 = vperm.xlu1 %1034, %v446_v48  }
  0x4c   :  { %783 = vperm.xlu0 %1033, %v441_v49   ;;  %788 = vperm.xlu1 %1034, %v442_v50  }
  0x50   :  { %807 = vperm.xlu0 %1033, %v453_v51   ;;  %812 = vperm.xlu1 %1034, %v454_v52  }
  0x54   :  { %884 = vperm.xlu0 %1033, %v881_v53  }
  0x81   :  { %v384_v56 = vpop.permute.xlu0 %383 }
  0x82   :  { %v394_v55 = vpop.permute.xlu1 %393 }
  0x85   :  { %v389_v58 = vpop.permute.xlu0 %388 }
  0x87   :  { %v399_v57 = vpop.permute.xlu1 %398 }
  0x89   :  { %v364_v60 = vpop.permute.xlu0 %363 }
  0x8b   :  { %v369_v59 = vpop.permute.xlu1 %368 }
  0x8d   :  { %v374_v5 = vpop.permute.xlu0 %373 }
  0x8f   :  { %v404_v3 = vpop.permute.xlu1 %403 }
  0x97   :  { %v379_v17 = vpop.permute.xlu1 %378  ;;  %v409_v19 = vpop.permute.xlu0 %408 }
  0x9b   :  { %v419_v37 = vpop.permute.xlu1 %418  ;;  %v414_v40 = vpop.permute.xlu0 %413 }
  0xca   :  { %v979_v61 = vpop.f32.mrf.mxu0 }
  0xcb   :  { %v995_v62 = vpop.f32.mrf.mxu1 }
  0xcc   :  { %v161_v63 = vpop.f32.mrf.mxu0  ;;  %v311_v6 = vadd.f32 %v995_v62, %v979_v61 }
  0xcd   :  { %v302_v0 = vpop.f32.mrf.mxu1 }
  0xce   :  { %v303_v1 = vadd.f32 %v302_v0, %v161_v63  ;;  %v980_v2 = vpop.f32.mrf.mxu0  ;;  %v1316_v14 = vadd.f32 %v374_v5, %v311_v6 }
  0xcf   :  { %v996_v4 = vpop.f32.mrf.mxu1 }
  0xd0   :  { %v164_v7 = vpop.f32.mrf.mxu0  ;;  %v1314_v9 = vadd.f32 %v364_v60, %v303_v1  ;;  %v314_v10 = vadd.f32 %v996_v4, %v980_v2  ;;  %v460_v27 = vsel %vm108_vm0, %v1316_v14, 0.0 }
  0xd1   :  { %v305_v8 = vpop.f32.mrf.mxu1 }
  0xd2   :  { %v306_v11 = vadd.f32 %v305_v8, %v164_v7  ;;  %v983_v12 = vpop.f32.mrf.mxu0  ;;  %v457_v20 = vsel %vm108_vm0, %v1314_v9, 0.0  ;;  %v1322_v21 = vadd.f32 %v379_v17, %v314_v10 }
  0xd3   :  { %v999_v13 = vpop.f32.mrf.mxu1 }
  0xd4   :  { %v1318_v15 = vadd.f32 %v369_v59, %v306_v11  ;;  %v177_v16 = vpop.f32.mrf.mxu0  ;;  %v327_v28 = vadd.f32 %v999_v13, %v983_v12  ;;  %v462_v32 = vsel %vm108_vm0, %v1322_v21, 0.0  ;;  %v1344_v59 = vpop.permute.xlu1 %614 }
  0xd5   :  { %v318_v18 = vpop.f32.mrf.mxu1 }
  0xd6   :  { %v458_v22 = vsel %vm108_vm0, %v1318_v15, 0.0  ;;  %v319_v23 = vadd.f32 %v318_v18, %v177_v16  ;;  %v984_v24 = vpop.f32.mrf.mxu0  ;;  %v1332_v41 = vadd.f32 %v394_v55, %v327_v28 }
  0xd7   :  { %v459_v25 = vadd.f32 %v458_v22, %v457_v20  ;;  %v1000_v26 = vpop.f32.mrf.mxu1 }
  0xd8   :  { %v180_v29 = vpop.f32.mrf.mxu0  ;;  %v1330_v33 = vadd.f32 %v384_v56, %v319_v23  ;;  %v330_v34 = vadd.f32 %v1000_v26, %v984_v24  ;;  %v558_v55 = vsel %vm108_vm0, %v1332_v41, 0.0 }
  0xd9   :  { %v461_v30 = vadd.f32 %v460_v27, %v459_v25  ;;  %v321_v31 = vpop.f32.mrf.mxu1 }
  0xda   :  { %v322_v35 = vadd.f32 %v321_v31, %v180_v29  ;;  %v987_v36 = vpop.f32.mrf.mxu0  ;;  %v555_v46 = vsel %vm108_vm0, %v1330_v33, 0.0  ;;  %v1338_v47 = vadd.f32 %v399_v57, %v330_v34  ;;  %v1346_v57 = vpop.permute.xlu0 %609 }
  0xdb   :  { %v463_v38 = vadd.f32 %v462_v32, %v461_v30  ;;  %v1003_v39 = vpop.f32.mrf.mxu1 }
  0xdc   :  { %v1334_v42 = vadd.f32 %v389_v58, %v322_v35  ;;  %v193_v43 = vpop.f32.mrf.mxu0  ;;  %v343_v56 = vadd.f32 %v1003_v39, %v987_v36  ;;  %v560_v63 = vsel %vm108_vm0, %v1338_v47, 0.0 }
  0xdd   :  { %v464_v44 = vrot.slane %v463_v38, 4  ;;  %v334_v45 = vpop.f32.mrf.mxu1 }
  0xde   :  { %v556_v48 = vsel %vm108_vm0, %v1334_v42, 0.0  ;;  %v335_v49 = vadd.f32 %v334_v45, %v193_v43  ;;  %v988_v50 = vpop.f32.mrf.mxu0  ;;  %v1352_v6 = vadd.f32 %v414_v40, %v343_v56  ;;  %v1364_v20 = vpop.permute.xlu0 %633 }
  0xdf   :  { %v465_v51 = vadd.f32 %v464_v44, %v463_v38  ;;  %v557_v52 = vadd.f32 %v556_v48, %v555_v46  ;;  %v1004_v53 = vpop.f32.mrf.mxu1 }
  0xe0   :  { %v196_v58 = vpop.f32.mrf.mxu0  ;;  %v1350_v0 = vadd.f32 %v404_v3, %v335_v49  ;;  %v346_v1 = vadd.f32 %v1004_v53, %v988_v50  ;;  %v1362_v3 = vpop.permute.xlu1 %638 }
  0xe1   :  { %v466_v60 = vrot.slane %v465_v51, 2  ;;  %v559_v61 = vadd.f32 %v558_v55, %v557_v52  ;;  %v337_v62 = vpop.f32.mrf.mxu1 }
  0xe2   :  { %v338_v2 = vadd.f32 %v337_v62, %v196_v58  ;;  %v739_v11 = vsel %vm108_vm0, %v1350_v0, 0.0  ;;  %v1358_v12 = vadd.f32 %v419_v37, %v346_v1  ;;  %v1390_v35 = vpop.permute.xlu0 %599 }
  0xe3   :  { %v467_v4 = vadd.f32 %v466_v60, %v465_v51  ;;  %v561_v5 = vadd.f32 %v560_v63, %v559_v61 }
  0xe4   :  { %v1354_v7 = vadd.f32 %v409_v19, %v338_v2  ;;  %v742_v19 = vsel %vm108_vm0, %v1352_v6, 0.0  ;;  %v744_v25 = vsel %vm108_vm0, %v1358_v12, 0.0  ;;  %v1382_v32 = vpop.permute.xlu1 %604 }
  0xe5   :  { %v468_v8 = vrot.slane %v467_v4, 1  ;;  %v562_v10 = vrot.slane %v561_v5, 4 }
  0xe6   :  { %v740_v13 = vsel %vm108_vm0, %v1354_v7, 0.0  ;;  %v1400_v51 = vpop.permute.xlu0 %512 }
  0xe7   :  { %v469_v16 = vadd.f32 %v468_v8, %v467_v4  ;;  %v563_v17 = vadd.f32 %v562_v10, %v561_v5  ;;  %v741_v18 = vadd.f32 %v740_v13, %v739_v11 }
  0xe8   :  { %v1397_v49 = vpop.permute.xlu1 %517 }
  0xe9   :  { %v471_v22 = vmul.f32 0.03125, %v469_v16  ;;  %v564_v23 = vrot.slane %v563_v17, 2  ;;  %v743_v24 = vadd.f32 %v742_v19, %v741_v18 }
  0xea   :  { %v1426_v10 = vpop.permute.xlu0 %623 }
  0xeb   :  { %v1371_v26 = vsub.f32 %v1314_v9, %v471_v22  ;;  %v1374_v27 = vsub.f32 %v1318_v15, %v471_v22  ;;  %v1377_v28 = vsub.f32 %v1316_v14, %v471_v22  ;;  %v1380_v29 = vsub.f32 %v1322_v21, %v471_v22 }
  0xec   :  { %v565_v30 = vadd.f32 %v564_v23, %v563_v17  ;;  %v745_v31 = vadd.f32 %v744_v25, %v743_v24  ;;  %v1424_v4 = vpop.permute.xlu1 %628 }
  0xed   :  { %v476_v34 = vmul.f32 %v1371_v26, %v1371_v26  ;;  %v477_v9 = vmul.f32 %v1374_v27, %v1374_v27  ;;  %v478_v15 = vmul.f32 %v1377_v28, %v1377_v28  ;;  %v479_v21 = vmul.f32 %v1380_v29, %v1380_v29 }
  0xee   :  { %v566_v14 = vrot.slane %v565_v30, 1  ;;  %v746_v36 = vrot.slane %v745_v31, 4 }
  0xef   :  { %v480_v37 = vsel %vm108_vm0, %v476_v34, 0.0  ;;  %v481_v38 = vsel %vm108_vm0, %v477_v9, 0.0  ;;  %v483_v44 = vsel %vm108_vm0, %v478_v15, 0.0  ;;  %v485_v50 = vsel %vm108_vm0, %v479_v21, 0.0 }
  0xf0   :  { %v482_v39 = vadd.f32 %v481_v38, %v480_v37  ;;  %v567_v40 = vadd.f32 %v566_v14, %v565_v30  ;;  %v747_v43 = vadd.f32 %v746_v36, %v745_v31  ;;  %v542_v34 = vpop.permute.xlu1 %541 }
  0xf2   :  { %v484_v45 = vadd.f32 %v483_v44, %v482_v39  ;;  %v568_v46 = vmul.f32 0.03125, %v567_v40  ;;  %v748_v48 = vrot.slane %v747_v43, 2 }
  0xf4   :  { %v486_v52 = vadd.f32 %v485_v50, %v484_v45  ;;  %v1403_v53 = vsub.f32 %v1330_v33, %v568_v46  ;;  %v1406_v55 = vsub.f32 %v1334_v42, %v568_v46  ;;  %v1409_v56 = vsub.f32 %v1332_v41, %v568_v46 }
  0xf5   :  { %v1412_v58 = vsub.f32 %v1338_v47, %v568_v46  ;;  %v749_v60 = vadd.f32 %v748_v48, %v747_v43  ;;  %v1453_v46 = vpop.permute.xlu1 %798 }
  0xf6   :  { %v487_v61 = vrot.slane %v486_v52, 4  ;;  %v573_v62 = vmul.f32 %v1403_v53, %v1403_v53  ;;  %v574_v63 = vmul.f32 %v1406_v55, %v1406_v55  ;;  %v575_v33 = vmul.f32 %v1409_v56, %v1409_v56 }
  0xf7   :  { %v750_v1 = vrot.slane %v749_v60, 1  ;;  %v576_v41 = vmul.f32 %v1412_v58, %v1412_v58 }
  0xf8   :  { %v488_v42 = vadd.f32 %v487_v61, %v486_v52  ;;  %v577_v2 = vsel %vm108_vm0, %v573_v62, 0.0  ;;  %v578_v47 = vsel %vm108_vm0, %v574_v63, 0.0  ;;  %v580_v13 = vsel %vm108_vm0, %v575_v33, 0.0 }
  0xf9   :  { %v579_v5 = vadd.f32 %v578_v47, %v577_v2  ;;  %v751_v8 = vadd.f32 %v750_v1, %v749_v60  ;;  %v582_v19 = vsel %vm108_vm0, %v576_v41, 0.0  ;;  %v508_v1 = vpop.permute.xlu1 %507 }
  0xfa   :  { %v489_v11 = vrot.slane %v488_v42, 2 }
  0xfb   :  { %v581_v16 = vadd.f32 %v580_v13, %v579_v5  ;;  %v752_v17 = vmul.f32 0.03125, %v751_v8 }
  0xfc   :  { %v490_v18 = vadd.f32 %v489_v11, %v488_v42 }
  0xfd   :  { %v583_v22 = vadd.f32 %v582_v19, %v581_v16  ;;  %v1431_v23 = vsub.f32 %v1350_v0, %v752_v17  ;;  %v1434_v24 = vsub.f32 %v1354_v7, %v752_v17  ;;  %v1437_v25 = vsub.f32 %v1352_v6, %v752_v17  ;;  %v537_v7 = vpop.permute.xlu0 %536  ;;  %v1458_v11 = vpop.permute.xlu1 %822 }
  0xfe   :  { %v491_v30 = vrot.slane %v490_v18, 1  ;;  %v1440_v31 = vsub.f32 %v1358_v12, %v752_v17 }
  0xff   :  { %v584_v9 = vrot.slane %v583_v22, 4  ;;  %v757_v15 = vmul.f32 %v1431_v23, %v1431_v23  ;;  %v758_v14 = vmul.f32 %v1434_v24, %v1434_v24  ;;  %v759_v0 = vmul.f32 %v1437_v25, %v1437_v25 }
 0x100   :  { %v492_v36 = vadd.f32 %v491_v30, %v490_v18  ;;  %v760_v6 = vmul.f32 %v1440_v31, %v1440_v31 }
 0x101   :  { %v585_v21 = vadd.f32 %v584_v9, %v583_v22  ;;  %v761_v12 = vsel %vm108_vm0, %v757_v15, 0.0  ;;  %v762_v37 = vsel %vm108_vm0, %v758_v14, 0.0  ;;  %v764_v43 = vsel %vm108_vm0, %v759_v0, 0.0  ;;  %v1456_v52 = vpop.permute.xlu0 %793 }
 0x102   :  { %v493_v38 = vmul.f32 0.03125, %v492_v36  ;;  %v763_v39 = vadd.f32 %v762_v37, %v761_v12  ;;  %v766_v50 = vsel %vm108_vm0, %v760_v6, 0.0 }
 0x103   :  { %v586_v40 = vrot.slane %v585_v21, 2 }
 0x104   :  { %v494_v44 = vadd.f32 1e-05, %v493_v38  ;;  %v765_v45 = vadd.f32 %v764_v43, %v763_v39 }
 0x105   :  { %v587_v48 = vadd.f32 %v586_v40, %v585_v21  ;;  %v503_v41 = vpop.permute.xlu0 %502  ;;  %v532_v21 = vpop.permute.xlu1 %531 }
 0x106   :  { %1051 = vrsqrt.f32 %v494_v44  ;;  %v767_v60 = vadd.f32 %v766_v50, %v765_v45 }
 0x107   :  { %v588_v61 = vrot.slane %v587_v48, 1 }
 0x108   :  { %v768_v62 = vrot.slane %v767_v60, 4 }
 0x109   :  { %v589_v63 = vadd.f32 %v588_v61, %v587_v48  ;;  %v1460_v13 = vpop.permute.xlu0 %817 }
 0x10a   :  { %v769_v33 = vadd.f32 %v768_v62, %v767_v60  ;;  %v789_v62 = vpop.permute.xlu1 %788 }
 0x10b   :  { %v590_v42 = vmul.f32 0.03125, %v589_v63 }
 0x10c   :  { %v770_v2 = vrot.slane %v769_v33, 2 }
 0x10d   :  { %v591_v47 = vadd.f32 1e-05, %v590_v42  ;;  %v527_v12 = vpop.permute.xlu0 %526 }
 0x10e   :  { %v771_v5 = vadd.f32 %v770_v2, %v769_v33 }
 0x10f   :  { %1053 = vrsqrt.f32 %v591_v47 }
 0x110   :  { %v772_v8 = vrot.slane %v771_v5, 1 }
 0x112   :  { %v773_v16 = vadd.f32 %v772_v8, %v771_v5  ;;  %v813_v5 = vpop.permute.xlu1 %812 }
 0x113   :  { %v1052_v17 = vpop.eup %1051 }
 0x114   :  { %v497_v18 = vmul.f32 %v1052_v17, %v1374_v27  ;;  %v774_v19 = vmul.f32 0.03125, %v773_v16  ;;  %v498_v22 = vmul.f32 %v1052_v17, %v1377_v28  ;;  %v499_v30 = vmul.f32 %v1052_v17, %v1380_v29 }
 0x115   :  { %v496_v9 = vmul.f32 %v1052_v17, %v1371_v26 }
 0x116   :  { %v521_v15 = vmul.f32 %v508_v1, %v497_v18  ;;  %v775_v14 = vadd.f32 1e-05, %v774_v19  ;;  %v522_v0 = vmul.f32 %v1400_v51, %v498_v22  ;;  %v523_v36 = vmul.f32 %v1397_v49, %v499_v30 }
 0x117   :  { %v520_v6 = vmul.f32 %v503_v41, %v496_v9 }
 0x118   :  { %1055 = vrsqrt.f32 %v775_v14  ;;  %v546_v37 = vadd.f32 %v537_v7, %v522_v0  ;;  %v547_v38 = vadd.f32 %v542_v34, %v523_v36  ;;  %v545_v27 = vadd.f32 %v532_v21, %v521_v15 }
 0x119   :  { %v544_v39 = vadd.f32 %v527_v12, %v520_v6 }
 0x11a   :  { %v550_v40 = vmax.f32 %v546_v37, 0.0  ;;  %v551_v28 = vmax.f32 %v547_v38, 0.0  ;;  %v549_v26 = vmax.f32 %v545_v27, 0.0 }
 0x11b   :  { %v548_v44 = vmax.f32 %v544_v39, 0.0 }
 0x11c   :  { %v1054_v43 = vpop.eup %1053  ;;  %v553_v29 = vpack.c.bf16 %v551_v28, %v550_v40 }
 0x11d   :  { %v594_v45 = vmul.f32 %v1054_v43, %v1406_v55  ;;  %v595_v51 = vmul.f32 %v1054_v43, %v1409_v56  ;;  %v596_v49 = vmul.f32 %v1054_v43, %v1412_v58  ;;  %v593_v48 = vmul.f32 %v1054_v43, %v1403_v53 }
 0x11e   :  { %1014 = vmatpush3.bf16.msra.mxu1 %v553_v29  ;;  %v552_v60 = vpack.c.bf16 %v549_v26, %v548_v44 }
 0x11f   :  { %v618_v7 = vmul.f32 %v1382_v32, %v594_v45  ;;  %1015 = vmatprep.subr.bf16.mxu1 %v1084_v54  ;;  %v619_v34 = vmul.f32 %v1346_v57, %v595_v51  ;;  %v620_v50 = vmul.f32 %v1344_v59, %v596_v49  ;;  %v617_v61 = vmul.f32 %v1390_v35, %v593_v48  ;;  %v554_v32 = vld [vmem:[%s1516_s7] sm:$0x3]  ;;  %v784_v59 = vpop.permute.xlu0 %783 }
 0x120   :  { %v894_v45 = vlaneseq }
 0x121   :  { %v643_v55 = vadd.f32 %v1364_v20, %v619_v34  ;;  %v644_v56 = vadd.f32 %v1362_v3, %v620_v50  ;;  %v642_v58 = vadd.f32 %v1424_v4, %v618_v7  ;;  %v641_v53 = vadd.f32 %v1426_v10, %v617_v61 }
 0x122   :  { %1016 = vmatpush3.bf16.msra.mxu1 %v552_v60  ;;  %v895_v51 = vshrl.u32 %v894_v45, 7 }
 0x123   :  { %v647_v57 = vmax.f32 %v643_v55, 0.0  ;;  %v648_v63 = vmax.f32 %v644_v56, 0.0  ;;  %v645_v35 = vmax.f32 %v641_v53, 0.0  ;;  %v646_v42 = vmax.f32 %v642_v58, 0.0  ;;  %v808_v17 = vpop.permute.xlu0 %807 }
 0x124   :  { %vm896_vm2 = vcmp.lt.s32.totalorder %v895_v51, 2 }
 0x125   :  { %v1056_v33 = vpop.eup %1055  ;;  %v650_v1 = vpack.c.bf16 %v648_v63, %v647_v57  ;;  %1018 = vmatmul.mubr.msk.bf16.vlgmr.msra.gmra.mxu1 %vm108_vm0, %v554_v32  ;;  %v649_v8 = vpack.c.bf16 %v646_v42, %v645_v35 }
 0x126   :  { %v778_v3 = vmul.f32 %v1056_v33, %v1434_v24  ;;  %v779_v20 = vmul.f32 %v1056_v33, %v1437_v25  ;;  %v780_v4 = vmul.f32 %v1056_v33, %v1440_v31  ;;  %v777_v10 = vmul.f32 %v1056_v33, %v1431_v23  ;;  %v942_v23 = vld [vmem:[%s1516_s7 + $0x2] sm:$0x3] }
 0x127   :  { %1006 = vmatpush3.bf16.msra.mxu0 %v650_v1 }
 0x128   :  { %v802_v41 = vmul.f32 %v789_v62, %v778_v3  ;;  %1007 = vmatprep.subr.bf16.mxu0 %v1084_v54  ;;  %v803_v2 = vmul.f32 %v1456_v52, %v779_v20  ;;  %v804_v47 = vmul.f32 %v1453_v46, %v780_v4  ;;  %v801_v16 = vmul.f32 %v784_v59, %v777_v10 }
 0x12a   :  { %v827_v24 = vadd.f32 %v1460_v13, %v803_v2  ;;  %v828_v25 = vadd.f32 %v1458_v11, %v804_v47  ;;  %v826_v18 = vadd.f32 %v813_v5, %v802_v41  ;;  %v825_v31 = vadd.f32 %v808_v17, %v801_v16  ;;  %v945_v13 = vld [vmem:[%s1516_s7 + $0x4] sm:$0x3]  ;;  %s1086_s7 = smov [#allocation2]  }
 0x12b   :  { %1008 = vmatpush3.bf16.msra.mxu0 %v649_v8  ;;  %s906_s18 = sshll.u32 %s1086_s7, 4  ;;  %s907_s18 = int_to_ptr.vmem [resolvable:$true] %s906_s18 }
 0x12c   :  { %1021 = vmatprep.subr.bf16.mxu0 %v1084_v54  ;;  %v831_v52 = vmax.f32 %v827_v24, 0.0  ;;  %v832_v19 = vmax.f32 %v828_v25, 0.0  ;;  %v829_v22 = vmax.f32 %v825_v31, 0.0  ;;  %v830_v30 = vmax.f32 %v826_v18, 0.0  ;;  %s1061_s19 = scalar_lea.vmem %s907_s18, 64  ;;  %p1066_p1 = scmp.lt.s32.totalorder %s907_s18, %s907_s18 }
 0x12d   :  { %p1062_p0 = scmp.ne.s32.totalorder %s907_s18, %s1061_s19  ;;  %p1067_p2 = scmp.lt.s32.totalorder %s1061_s19, %s1061_s19 }
 0x12e   :  { %1010 = vmatmul.mubr.msk.bf16.vlgmr.msra.gmra.mxu0 %vm108_vm0, %v942_v23  ;;  %v834_v46 = vpack.c.bf16 %v832_v19, %v831_v52  ;;  %v833_v11 = vpack.c.bf16 %v830_v30, %v829_v22 }
 0x12f   :  { %1025 = vmatprep.mubr.msk.bf16.mxu0 %vm1085_vm1, %v1084_v54  ;;  %p1068_p3 = por %p1067_p2, %p1066_p1 }
 0x130   :  { %1022 = vmatpush3.bf16.msra.mxu0 %v834_v46 }
 0x131   :  { %1023 = vmatprep.subr.bf16.mxu0 %v1084_v54  ;;  %v885_v54 = vpop.permute.xlu0 %884  ;;  %p1069_p4 = pnand %p1068_p3, %p1062_p0 }
 0x134   :  { %1024 = vmatpush3.bf16.msra.mxu0 %v833_v11 }
 0x137   :  { %1026 = vmatmul.mubr.msk.bf16.vlgmr.msra.gmra.mxu0 %vm108_vm0, %v945_v13 }
 0x1e5   :  { %v733_v9 = vpop.f32.mrf.mxu1 }
 0x1e7   :  { %v1019_v15 = vpop.f32.mrf.mxu1 }
 0x1e9   :  { %v736_v14 = vpop.f32.mrf.mxu1 }
 0x1eb   :  { %v1020_v0 = vpop.f32.mrf.mxu1 }
 0x1ee   :  { %v690_v36 = vpop.f32.mrf.mxu0 }
 0x1ef   :  { %v734_v37 = vadd.f32 %v733_v9, %v690_v36 }
 0x1f0   :  { %v1011_v21 = vpop.f32.mrf.mxu0 }
 0x1f2   :  { %v693_v6 = vpop.f32.mrf.mxu0 }
 0x1f4   :  { %v1012_v12 = vpop.f32.mrf.mxu0 }
 0x1f7   :  { %v874_v38 = vpop.f32.mrf.mxu0 }
 0x1f8   :  { %v880_v27 = vadd.f32 %v874_v38, %v734_v37 }
 0x1f9   :  { %v1027_v39 = vpop.f32.mrf.mxu0 }
 0x1fa   :  { %v887_v40 = vadd.f32 %v885_v54, %v880_v27 }
 0x1fb   :  { %v877_v28 = vpop.f32.mrf.mxu0 }
 0x1fc   :  { %v947_v43 = vmul.f32 -1.442695, %v887_v40 }
 0x1fd   :  { %v1028_v29 = vpop.f32.mrf.mxu0 }
 0x1fe   :  { %1057 = vpow2.f32 %v947_v43 }
 0x20b   :  { %v1058_v44 = vpop.eup %1057 }
 0x20c   :  { %v891_v26 = vadd.f32 1.0, %v1058_v44 }
 0x20e   :  { %1059 = vrcp.f32 %v891_v26 }
 0x21b   :  { %v1060_v49 = vpop.eup %1059 }
 0x21c   :  { %v897_v48 = vsel %vm896_vm2, %v1060_v49, %v887_v40 }
 0x21d   :  { %899 = vst.msk [vmem:[#allocation2] sm:$0xf] %vm898_vm3, %v897_v48 }
 0x21e   :  { %1072 = shalt.err (!%p1069_p4)
}
 0x21f   :  { %909 = dma.vmem_to_hbm [thread:$0]  %s907_s18, 64, %s1518_s9, [#allocation3]  }
 0x220   :  { %1081 = dma.done.wait [#allocation3], 64  }
 0x221   :  { %1082 = vsyncadd [#allocation3], 4294967232 }
 0x222   :  { %913 = vsyncpa [#allocation3], 1 }

</bundles_post_ra>
